<compile_context>
chip_gen: v5e
topology: v5e:2x2
jax: 0.10.0
libtpu: 0.0.40
codegen_flags: <defaults>
</compile_context>

<pallas_src>
import functools

import jax
import jax.numpy as jnp
from jax.experimental import pallas as pl
from jax.experimental.pallas import tpu as pltpu


def _local_expert_kernel(x_ref, w1t_ref, b1_ref, w2_ref, b2_ref,
                         z1_ref, z2_ref, acc_ref, *,
                         negative_slope, hidden_size):
    j = pl.program_id(1)                 # hidden (reduction) axis, innermost
    num_h = pl.num_programs(1)
    th = w2_ref.shape[-1]                # static block width along H

    @pl.when(j == 0)
    def _():
        acc_ref[...] = jnp.zeros_like(acc_ref)

    # fc1 slice: [tb, D] @ [D, th] on the MXU, f32 accumulation.  w1 was
    # pre-transposed in the wrapper, so this is a plain (lhs dim 1, rhs dim 0)
    # contraction -- no per-step weight relayout.
    z1 = jnp.dot(x_ref[...], w1t_ref[...], preferred_element_type=jnp.float32)
    z1 = z1 + b1_ref[...]

    # leaky_relu (VPU).  max(z, slope*z) == leaky_relu for 0 <= slope <= 1.
    if 0.0 <= negative_slope <= 1.0:
        z1 = jnp.maximum(z1, negative_slope * z1)
    else:
        z1 = jnp.where(z1 >= 0, z1, negative_slope * z1)
    z1_ref[...] = z1.astype(z1_ref.dtype)

    # fc2 partial sum over this H slice, produced directly in the lane-dense
    # transposed layout: [1, th] x [tb, th]^T -> [1, tb].
    if hidden_size % th != 0:
        # Ragged last H tile: zero the padded columns of BOTH operands so
        # stale-VMEM garbage cannot poison the accumulation.
        col = jax.lax.broadcasted_iota(jnp.int32, (1, th), 1)
        valid = (j * th + col) < hidden_size
        w2v = jnp.where(valid, w2_ref[...], 0.0)
        z1c = jnp.where(valid, z1, 0.0)
    else:
        w2v = w2_ref[...]
        z1c = z1
    acc_ref[...] += jax.lax.dot_general(
        w2v, z1c,
        dimension_numbers=(((1,), (1,)), ((), ())),
        preferred_element_type=jnp.float32,
    )

    @pl.when(j == num_h - 1)
    def _():
        z2 = acc_ref[...] + b2_ref[0, 0]            # scalar bias from SMEM
        # sigmoid: exp on the EUP; exact reciprocal keeps the 1e-5 tolerance
        # (f32: exp(-z)->inf still gives 1/inf == 0, matching sigmoid).
        z2 = pl.reciprocal(1.0 + jnp.exp(-z2))
        z2_ref[...] = z2.astype(z2_ref.dtype)       # unmasked lane-dense store


def _round_up(x, m):
    return ((x + m - 1) // m) * m


def _vmem_capacity_bytes():
    """Per-core VMEM capacity, with a conservative (v7x-sized) fallback."""
    try:
        info = pltpu.get_tpu_info()
        cap = getattr(info, "vmem_capacity_bytes", None)
        if cap:
            return max(32 << 20, min(int(cap), 128 << 20))
    except Exception:
        pass
    return 64 << 20


def _vmem_need(tb, th, D, x_bytes, out_bytes):
    """Pallas double-buffers every pipelined input/output (even constant-index
    blocks), so everything except the scratch is counted twice."""
    return (2 * tb * D * x_bytes        # x tile
            + 2 * D * th * x_bytes      # w1^T tile (resident when th == H)
            + 2 * 2 * th * 4            # b1 + w2 rows (f32)
            + 2 * tb * th * out_bytes   # z1 output tile
            + 2 * tb * out_bytes        # z2 row tile
            + tb * 4)                   # f32 accumulator scratch


def _pick_tiles(B, D, H, x_bytes, out_bytes, budget):
    """Choose (tb, th).  tb is either B (single tile) or a multiple of 128 so
    the transposed [1, B] z2 output block stays lane-aligned; th is H (weight
    fully resident, preferred) or a multiple of 128 (w1 streamed)."""
    th_cands = [H] + [t for t in (2048, 1024, 512, 256, 128) if t < H]
    tb_cands = ([B] if B <= 1024 else []) + [t for t in (1024, 512, 256, 128) if t < B]
    if not tb_cands:
        tb_cands = [B]

    tb, th = tb_cands[-1], th_cands[-1]   # smallest combo as a last resort
    done = False
    for cand_th in th_cands:              # prefer keeping the whole weight resident
        for cand_tb in tb_cands:          # then the largest batch tile that fits
            if _vmem_need(cand_tb, cand_th, D, x_bytes, out_bytes) <= budget:
                tb, th = cand_tb, cand_th
                done = True
                break
        if done:
            break

    # Guarantee >=2 batch grid steps for v7x's two TensorCores when B is large
    # enough that each half is still a full 128-lane block.
    if tb >= B and B >= 256:
        half = _round_up((B + 1) // 2, 128)
        if half < B:
            tb = half
    return tb, th


def local_expert_forward(x, w1, b1, w2, b2, negative_slope=0.2,
                         matmul_dtype=None):
    """x: [B, D]; w1: [H, D]; b1: [H]; w2: [1, H]; b2: [1] (PyTorch Linear layout)."""
    B, D = x.shape
    H = w1.shape[0]
    out_dtype = x.dtype

    # Optional reduced-precision MXU operands (bf16 halves x/w1 HBM bytes and
    # VMEM residency; note it changes z1 as well as z2).
    x_mm = x if matmul_dtype is None else x.astype(matmul_dtype)
    w1t = jnp.transpose(w1)                 # one-time [H,D] -> [D,H] HBM transpose
    if matmul_dtype is not None:
        w1t = w1t.astype(matmul_dtype)

    x_bytes = jnp.dtype(x_mm.dtype).itemsize
    out_bytes = jnp.dtype(out_dtype).itemsize

    cap = _vmem_capacity_bytes()
    vmem_ceiling = min(cap - (16 << 20), 100 << 20)   # 48 MiB on v7x, 100 MiB on v5e/v6e
    tb, th = _pick_tiles(B, D, H, x_bytes, out_bytes, vmem_ceiling)

    num_b = pl.cdiv(B, tb)
    num_h = pl.cdiv(H, th)

    need = _vmem_need(tb, th, D, x_bytes, out_bytes)
    vmem_limit = int(min(max(need * 3 // 2, 16 << 20), vmem_ceiling))

    b1_2d = b1.reshape(1, H).astype(jnp.float32)   # broadcast row over batch
    w2_2d = w2.reshape(1, H).astype(jnp.float32)   # fc2 weight row
    b2_2d = b2.reshape(1, 1).astype(jnp.float32)   # SMEM scalar

    kernel = functools.partial(_local_expert_kernel,
                               negative_slope=float(negative_slope),
                               hidden_size=H)

    z1, z2_row = pl.pallas_call(
        kernel,
        grid=(num_b, num_h),
        out_shape=(
            jax.ShapeDtypeStruct((B, H), out_dtype),
            jax.ShapeDtypeStruct((1, B), out_dtype),   # lane-dense transposed z2
        ),
        in_specs=[
            pl.BlockSpec((tb, D), lambda i, j: (i, 0)),           # x: batch-tiled
            pl.BlockSpec((D, th), lambda i, j: (0, j)),           # w1^T: resident / H-streamed
            pl.BlockSpec((1, th), lambda i, j: (0, j)),           # b1 row
            pl.BlockSpec((1, th), lambda i, j: (0, j)),           # w2 row
            pl.BlockSpec(memory_space=pltpu.MemorySpace.SMEM),    # b2: SMEM scalar
        ],
        out_specs=(
            pl.BlockSpec((tb, th), lambda i, j: (i, j)),          # z1
            pl.BlockSpec((1, tb), lambda i, j: (0, i)),           # z2 (revisited over j)
        ),
        scratch_shapes=[pltpu.VMEM((1, tb), jnp.float32)],        # fc2 accumulator
        compiler_params=pltpu.CompilerParams(
            dimension_semantics=("parallel", "arbitrary"),
            vmem_limit_bytes=vmem_limit,
        ),
    )(x_mm, w1t, b1_2d, w2_2d, b2_2d)

    return z1, z2_row.reshape(B, 1)


def _reference(x, w1, b1, w2, b2, negative_slope=0.2):
    z1 = x @ w1.T + b1
    z1 = jnp.where(z1 >= 0, z1, negative_slope * z1)
    z2 = z1 @ w2.T + b2
    z2 = jax.nn.sigmoid(z2)
    return z1, z2


if __name__ == "__main__":
    key = jax.random.PRNGKey(0)
    k_x, k_w1, k_b1, k_w2, k_b2 = jax.random.split(key, 5)

    batch = 8
    input_size = 32
    hidden_size = 32

    x = jax.random.normal(k_x, (batch, input_size), dtype=jnp.float32)
    # Deterministic parameter init (uniform, roughly matching nn.Linear scale).
    bound1 = 1.0 / (input_size ** 0.5)
    w1 = jax.random.uniform(k_w1, (hidden_size, input_size), jnp.float32, -bound1, bound1)
    b1 = jax.random.uniform(k_b1, (hidden_size,), jnp.float32, -bound1, bound1)
    bound2 = 1.0 / (hidden_size ** 0.5)
    w2 = jax.random.uniform(k_w2, (1, hidden_size), jnp.float32, -bound2, bound2)
    b2 = jax.random.uniform(k_b2, (1,), jnp.float32, -bound2, bound2)

    z1, z2 = local_expert_forward(x, w1, b1, w2, b2, negative_slope=0.2)
    jax.block_until_ready((z1, z2))

    z1_ref, z2_ref = _reference(x, w1, b1, w2, b2, negative_slope=0.2)
    assert z1.shape == (batch, hidden_size) and z2.shape == (batch, 1)
    assert jnp.allclose(z1, z1_ref, atol=1e-5, rtol=1e-5)
    assert jnp.allclose(z2, z2_ref, atol=1e-5, rtol=1e-5)

    print("KERNEL_OK")
</pallas_src>

<mosaic_0001>
module attributes {stable_mosaic.version = 11 : i64} {
  func.func @_local_expert_kernel(%arg0: i32, %arg1: i32, %arg2: memref<8x32xf32, #tpu.memory_space<vmem>>, %arg3: memref<32x32xf32, #tpu.memory_space<vmem>>, %arg4: memref<1x32xf32, #tpu.memory_space<vmem>>, %arg5: memref<1x32xf32, #tpu.memory_space<vmem>>, %arg6: memref<1x1xf32, #tpu.memory_space<smem>>, %arg7: memref<8x32xf32, #tpu.memory_space<vmem>>, %arg8: memref<1x8xf32, #tpu.memory_space<vmem>>, %arg9: memref<1x8xf32, #tpu.memory_space<vmem>>) attributes {dimension_semantics = [#tpu.dimension_semantics<parallel>, #tpu.dimension_semantics<arbitrary>], iteration_bounds = array<i64: 1, 1>, scalar_prefetch = 0 : i64, scratch_operands = 1 : i64, tpu.core_type = #tpu.core_type<tc>, window_params = [{transform_indices = @transform_0, window_bounds = array<i64: 8, 32>}, {transform_indices = @transform_1, window_bounds = array<i64: 32, 32>}, {transform_indices = @transform_2, window_bounds = array<i64: 1, 32>}, {transform_indices = @transform_3, window_bounds = array<i64: 1, 32>}, {transform_indices = @transform_4, window_bounds = array<i64: 1, 1>}, {transform_indices = @transform_5, window_bounds = array<i64: 8, 32>}, {transform_indices = @transform_6, window_bounds = array<i64: 1, 8>}]} {
    %c0_i32 = arith.constant 0 : i32
    %0 = arith.cmpi eq, %arg1, %c0_i32 : i32
    %1 = arith.extui %0 : i1 to i32
    %c0_i32_0 = arith.constant 0 : i32
    %2 = arith.cmpi ne, %1, %c0_i32_0 : i32
    scf.if %2 {
      %cst_18 = arith.constant 0.000000e+00 : f32
      %21 = vector.broadcast %cst_18 : f32 to vector<1x8xf32>
      %c0_19 = arith.constant 0 : index
      %c0_20 = arith.constant 0 : index
      %22 = vector.load %arg9[%c0_19, %c0_20] : memref<1x8xf32, #tpu.memory_space<vmem>>, vector<1x8xf32>
      tpu.vector_store %arg9[%c0_19, %c0_20], %21 {strides = array<i32>} : memref<1x8xf32, #tpu.memory_space<vmem>>, vector<1x8xf32>,
    } else {
    }
    %c0 = arith.constant 0 : index
    %c0_1 = arith.constant 0 : index
    %3 = vector.load %arg2[%c0, %c0_1] : memref<8x32xf32, #tpu.memory_space<vmem>>, vector<8x32xf32>
    %c0_2 = arith.constant 0 : index
    %c0_3 = arith.constant 0 : index
    %4 = vector.load %arg3[%c0_2, %c0_3] : memref<32x32xf32, #tpu.memory_space<vmem>>, vector<32x32xf32>
    %cst = arith.constant dense<0.000000e+00> : vector<8x32xf32>
    %5 = tpu.matmul %3, %4, %cst {dimension_numbers = #tpu.dot_dimension_numbers<[1], [0], [0], [1], [0, 0, 1, 1], [], []>} : vector<8x32xf32>, vector<32x32xf32>, vector<8x32xf32> -> vector<8x32xf32>
    %c0_4 = arith.constant 0 : index
    %c0_5 = arith.constant 0 : index
    %6 = vector.load %arg4[%c0_4, %c0_5] : memref<1x32xf32, #tpu.memory_space<vmem>>, vector<1x32xf32>
    %7 = vector.broadcast %6 : vector<1x32xf32> to vector<8x32xf32>
    %8 = arith.addf %5, %7 : vector<8x32xf32>
    %cst_6 = arith.constant 2.000000e-01 : f32
    %9 = vector.broadcast %cst_6 : f32 to vector<8x32xf32>
    %10 = arith.mulf %9, %8 : vector<8x32xf32>
    %11 = arith.maximumf %8, %10 : vector<8x32xf32>
    %c0_7 = arith.constant 0 : index
    %c0_8 = arith.constant 0 : index
    %12 = vector.load %arg7[%c0_7, %c0_8] : memref<8x32xf32, #tpu.memory_space<vmem>>, vector<8x32xf32>
    tpu.vector_store %arg7[%c0_7, %c0_8], %11 {strides = array<i32>} : memref<8x32xf32, #tpu.memory_space<vmem>>, vector<8x32xf32>,
    %c0_9 = arith.constant 0 : index
    %c0_10 = arith.constant 0 : index
    %13 = vector.load %arg5[%c0_9, %c0_10] : memref<1x32xf32, #tpu.memory_space<vmem>>, vector<1x32xf32>
    %c0_11 = arith.constant 0 : index
    %c0_12 = arith.constant 0 : index
    %14 = vector.load %arg9[%c0_11, %c0_12] : memref<1x8xf32, #tpu.memory_space<vmem>>, vector<1x8xf32>
    %cst_13 = arith.constant dense<0.000000e+00> : vector<1x8xf32>
    %15 = tpu.matmul %13, %11, %cst_13 {dimension_numbers = #tpu.dot_dimension_numbers<[1], [1], [0], [0], [0, 0, 1, 0], [], []>} : vector<1x32xf32>, vector<8x32xf32>, vector<1x8xf32> -> vector<1x8xf32>
    %16 = arith.addf %14, %15 : vector<1x8xf32>
    %c0_14 = arith.constant 0 : index
    %c0_15 = arith.constant 0 : index
    %17 = vector.load %arg9[%c0_14, %c0_15] : memref<1x8xf32, #tpu.memory_space<vmem>>, vector<1x8xf32>
    tpu.vector_store %arg9[%c0_14, %c0_15], %16 {strides = array<i32>} : memref<1x8xf32, #tpu.memory_space<vmem>>, vector<1x8xf32>,
    %c0_i32_16 = arith.constant 0 : i32
    %18 = arith.cmpi eq, %arg1, %c0_i32_16 : i32
    %19 = arith.extui %18 : i1 to i32
    %c0_i32_17 = arith.constant 0 : i32
    %20 = arith.cmpi ne, %19, %c0_i32_17 : i32
    scf.if %20 {
      %c0_18 = arith.constant 0 : index
      %c0_19 = arith.constant 0 : index
      %21 = vector.load %arg9[%c0_18, %c0_19] : memref<1x8xf32, #tpu.memory_space<vmem>>, vector<1x8xf32>
      %c0_20 = arith.constant 0 : index
      %c0_21 = arith.constant 0 : index
      %22 = memref.load %arg6[%c0_20, %c0_21] : memref<1x1xf32, #tpu.memory_space<smem>>
      %23 = vector.broadcast %22 : f32 to vector<1x8xf32>
      %24 = arith.addf %21, %23 : vector<1x8xf32>
      %cst_22 = arith.constant 0.000000e+00 : f32
      %25 = vector.broadcast %cst_22 : f32 to vector<1x8xf32>
      %26 = arith.subf %25, %24 : vector<1x8xf32>
      %27 = math.exp %26 : vector<1x8xf32>
      %cst_23 = arith.constant 1.000000e+00 : f32
      %28 = vector.broadcast %cst_23 : f32 to vector<1x8xf32>
      %29 = arith.addf %28, %27 : vector<1x8xf32>
      %30 = tpu.reciprocal %29 : vector<1x8xf32> -> vector<1x8xf32>
      %c0_24 = arith.constant 0 : index
      %c0_25 = arith.constant 0 : index
      %31 = vector.load %arg8[%c0_24, %c0_25] : memref<1x8xf32, #tpu.memory_space<vmem>>, vector<1x8xf32>
      tpu.vector_store %arg8[%c0_24, %c0_25], %30 {strides = array<i32>} : memref<1x8xf32, #tpu.memory_space<vmem>>, vector<1x8xf32>,
    } else {
    }
    return
  }
  func.func @transform_0(%arg0: i32, %arg1: i32) -> (i32, i32) {
    %c0_i32 = arith.constant 0 : i32
    %c0_i32_0 = arith.constant 0 : i32
    return %arg0, %c0_i32 : i32, i32
  }
  func.func @transform_1(%arg0: i32, %arg1: i32) -> (i32, i32) {
    %c0_i32 = arith.constant 0 : i32
    %c0_i32_0 = arith.constant 0 : i32
    return %c0_i32, %arg1 : i32, i32
  }
  func.func @transform_2(%arg0: i32, %arg1: i32) -> (i32, i32) {
    %c0_i32 = arith.constant 0 : i32
    %c0_i32_0 = arith.constant 0 : i32
    return %c0_i32, %arg1 : i32, i32
  }
  func.func @transform_3(%arg0: i32, %arg1: i32) -> (i32, i32) {
    %c0_i32 = arith.constant 0 : i32
    %c0_i32_0 = arith.constant 0 : i32
    return %c0_i32, %arg1 : i32, i32
  }
  func.func @transform_4(%arg0: i32, %arg1: i32) -> (i32, i32) {
    %c0_i32 = arith.constant 0 : i32
    %c0_i32_0 = arith.constant 0 : i32
    %c0_i32_1 = arith.constant 0 : i32
    return %c0_i32, %c0_i32_0 : i32, i32
  }
  func.func @transform_5(%arg0: i32, %arg1: i32) -> (i32, i32) {
    %c0_i32 = arith.constant 0 : i32
    return %arg0, %arg1 : i32, i32
  }
  func.func @transform_6(%arg0: i32, %arg1: i32) -> (i32, i32) {
    %c0_i32 = arith.constant 0 : i32
    %c0_i32_0 = arith.constant 0 : i32
    return %c0_i32, %arg0 : i32, i32
  }
}

</mosaic_0001>

<bundles_post_ra>
// kernel: tpu_custom_call.1
= control target key start
LH: loop header
LB: loop body
LE: loop exit
PB: predicated region body
PF: predicated region fallthrough
CT: control target
= control target key end

     0   :  { %13 = vsyncpa [#allocation5], 0  ;;  %s373_s0 = inlined_call_operand.hbm [shape: f32[8,32], index: 0, kind: input, shape index: {}]   ;;  %s374_s1 = inlined_call_operand.hbm [shape: f32[32,32], index: 1, kind: input, shape index: {}]   ;;  %s375_s2 = inlined_call_operand.vmem [shape: f32[1,32], index: 2, kind: input, shape index: {}]   ;;  %s376_s3 = inlined_call_operand.vmem [shape: f32[1,32], index: 3, kind: input, shape index: {}]   ;;  %s377_s4 = inlined_call_operand.<no memory space> [shape: f32[1,1], index: 4, kind: input, shape index: {}]   ;;  %s378_s5 = inlined_call_operand.hbm [shape: f32[8,32], index: 5, kind: output, shape index: {0}]   ;;  %s379_s6 = inlined_call_operand.hbm [shape: f32[1,8], index: 6, kind: output, shape index: {1}]  }
   0x1   :  { %14 = vsyncpa [#allocation8], 0 }
   0x2   :  { %15 = vsyncpa [#allocation6], 0 }
   0x3   :  { %16 = vsyncpa [#allocation11], 0  ;;  %s22_s23 = sshll.u32 %s373_s0, 4  ;;  %s307_s24 = smov [#allocation4]   ;;  %s23_s23 = int_to_ptr.hbm [resolvable:$true] %s22_s23 }
   0x4   :  { %s24_s25 = sshll.u32 %s307_s24, 4  ;;  %s32_s28 = sshll.u32 %s374_s1, 4  ;;  %s25_s25 = int_to_ptr.vmem [resolvable:$true] %s24_s25  ;;  %s33_s28 = int_to_ptr.hbm [resolvable:$true] %s32_s28 }
   0x5   :  { %27 = dma.hbm_to_vmem [thread:$0]  %s23_s23, 128, %s25_s25, [#allocation5]  }
   0x6   :  { %s308_s29 = smov [#allocation7]   ;;  %s309_s7 = smov 128  }
   0x7   :  { %s34_s30 = sshll.u32 %s308_s29, 4  ;;  %s310_s8 = smov 8   ;;  %s35_s30 = int_to_ptr.vmem [resolvable:$true] %s34_s30 }
   0x8   :  { %40 = dma.hbm_to_vmem [thread:$0]  %s33_s28, 512, %s35_s30, [#allocation8], %s309_s7, %s309_s7, %s310_s8  }
   0x9   :  { %299 = dma.done.wait [#allocation5], 128  }
   0xa   :  { %300 = vsyncadd [#allocation5], 4294967168 }
   0xb   :  { %301 = dma.done.wait [#allocation8], 512  }
   0xc   :  { %302 = vsyncadd [#allocation8], 4294966784  ;;  %v65_v0 = vld [vmem:[#allocation7 + $0x18] sm:$0xff]  ;;  %v64_v1 = vld [vmem:[#allocation7 + $0x10] sm:$0xff]  ;;  %vm70_vm0 = vcmask 261120   ;;  %vm59_vm1 = vcmask 57344   ;;  %v133_v15 = vstv %s377_s4 }
   0xd   :  { %86 = vmatpush.msra.mxu0 %v65_v0  ;;  %v63_v2 = vld [vmem:[#allocation7 + $0x8] sm:$0xff]  ;;  %v62_v3 = vld [vmem:[#allocation7] sm:$0xff]  ;;  %v61_v4 = vld [vmem:[#allocation4] sm:$0xff]  ;;  %v311_v5 = vmov 0.0   ;;  %s161_s13 = sshll.u32 %s378_s5, 4  ;;  %s312_s14 = smov [#allocation9]   ;;  %s162_s13 = int_to_ptr.hbm [resolvable:$true] %s161_s13 }
   0xe   :  { %60 = vst.msk [vmem:[#allocation2] sm:$0x1] %vm59_vm1, %v311_v5  ;;  %v198_v6 = vld [vmem:[%s375_s2] ss:$0 sm:$0xff]  ;;  %s159_s15 = sshll.u32 %s312_s14, 4  ;;  %s172_s4 = sshll.u32 %s379_s6, 4  ;;  %s160_s15 = int_to_ptr.vmem [resolvable:$true] %s159_s15  ;;  %s173_s4 = int_to_ptr.hbm [resolvable:$true] %s172_s4 }
   0xf   :  { %87 = vmatpush.msra.mxu0 %v64_v1  ;;  %v97_v11 = vld [vmem:[%s376_s3] sm:$0x1]  ;;  %s313_s3 = smov [#allocation10]  }
  0x10   :  { %s170_s5 = sshll.u32 %s313_s3, 4  ;;  %s171_s5 = int_to_ptr.vmem [resolvable:$true] %s170_s5 }
  0x11   :  { %88 = vmatpush.msra.mxu0 %v63_v2 }
  0x13   :  { %89 = vmatpush.msra.mxu0 %v62_v3 }
  0x14   :  { %188 = vmatmul.msk.f32.vlgmr.msra.gmra.mxu0 %vm70_vm0, %v61_v4 }
  0x15   :  { %v98_v12 = vld [vmem:[#allocation2] sm:$0x1] }
  0x91   :  { %v91_v7 = vpop.f32.mrf.mxu0 }
  0x92   :  { %v92_v8 = vadd.f32 %v198_v6, %v91_v7 }
  0x94   :  { %v94_v9 = vmul.f32 0.2, %v92_v8 }
  0x96   :  { %v95_v10 = vmax.f32 %v92_v8, %v94_v9 }
  0x98   :  { %189 = vmatpush.xpose.msk.msra.mxu1 %vm70_vm0, %v95_v10  ;;  %96 = vst.msk [vmem:[#allocation9] sm:$0xff] %vm70_vm0, %v95_v10 }
  0x99   :  { %164 = dma.vmem_to_hbm [thread:$0]  %s160_s15, 128, %s162_s13, [#allocation6]  }
  0x9b   :  { %190 = vmatmul.msk.f32.vlgmr.msra.gmra.mxu1 %vm70_vm0, %v97_v11 }
 0x118   :  { %v122_v13 = vpop.f32.mrf.mxu1 }
 0x119   :  { %v125_v14 = vadd.f32 %v122_v13, %v98_v12 }
 0x11b   :  { %127 = vst.msk [vmem:[#allocation2] sm:$0x1] %vm59_vm1, %v125_v14 }
 0x122   :  { %v131_v16 = vld [vmem:[#allocation2] sm:$0x1] }
 0x123   :  { %v134_v17 = vadd.f32 %v133_v15, %v131_v16 }
 0x125   :  { %v135_v18 = vsub.f32 0.0, %v134_v17 }
 0x127   :  { %v136_v19 = vmul.f32 1.442695, %v135_v18 }
 0x129   :  { %199 = vpow2.f32 %v136_v19 }
 0x12f   :  { %v200_v20 = vpop.eup %199 }
 0x130   :  { %v138_v21 = vadd.f32 1.0, %v200_v20 }
 0x132   :  { %201 = vrcp.f32 %v138_v21  ;;  %v150_v25 = vand.u32 2147483648, %v138_v21  ;;  %v148_v27 = vand.u32 2147483647, %v138_v21  ;;  %vm144_vm3 = vweird.f32 %v138_v21 }
 0x134   :  { %v151_v29 = vor.u32 1.1754944e-38, %v150_v25  ;;  %vm149_vm5 = vcmp.eq.f32.partialorder %v148_v27, 8.507059e+37 }
 0x138   :  { %v202_v22 = vpop.eup %201 }
 0x139   :  { %v140_v23 = vmul.f32 %v202_v22, %v138_v21  ;;  %vm145_vm2 = vweird.f32 %v202_v22 }
 0x13a   :  { %vm146_vm4 = vmor %vm144_vm3, %vm145_vm2 }
 0x13b   :  { %v141_v24 = vsub.f32 1.0, %v140_v23 }
 0x13d   :  { %v142_v26 = vmul.f32 %v202_v22, %v141_v24 }
 0x13f   :  { %v143_v28 = vadd.f32 %v202_v22, %v142_v26 }
 0x141   :  { %v147_v30 = vsel %vm146_vm4, %v202_v22, %v143_v28 }
 0x142   :  { %v152_v31 = vsel %vm149_vm5, %v151_v29, %v147_v30 }
 0x143   :  { %153 = vst.msk [vmem:[#allocation10] sm:$0x1] %vm59_vm1, %v152_v31 }
 0x144   :  { %175 = dma.vmem_to_hbm [thread:$0]  %s171_s5, 16, %s173_s4, [#allocation11]  }
 0x145   :  { %303 = dma.done.wait [#allocation6], 128  }
 0x146   :  { %304 = vsyncadd [#allocation6], 4294967168 }
 0x147   :  { %305 = dma.done.wait [#allocation11], 16  }
 0x148   :  { %306 = vsyncadd [#allocation11], 4294967280 }
 0x149   :  { %184 = vsyncpa [#allocation5], 1 }
 0x14a   :  { %185 = vsyncpa [#allocation8], 1 }
 0x14b   :  { %186 = vsyncpa [#allocation6], 1 }
 0x14c   :  { %187 = vsyncpa [#allocation11], 1 }

</bundles_post_ra>
